<compile_context>
chip_gen: v7x
topology: tpu7x:2x2x1
jax: 0.10.0
libtpu: 0.0.40
codegen_flags: <defaults>
</compile_context>

<pallas_src>
import math
import functools

import jax
import jax.numpy as jnp
from jax.experimental import pallas as pl
from jax.experimental.pallas import tpu as pltpu


def _attention_body(x_ref, mask_ref, wq_ref, bq_ref, wk_ref, bk_ref,
                    wv_ref, bv_ref, wo3_ref, bo_ref, gamma_ref, beta_ref,
                    o_ref, *, num_heads, head_size, eps):
    """One batch element per grid step, fully fused in VMEM."""
    nh, d = num_heads, head_size

    x32 = x_ref[0].astype(jnp.float32)        # (S, H) f32 for residual / LN
    xb = x32.astype(jnp.bfloat16)             # bf16 MXU input

    def proj(w_ref, b_ref):
        y = jnp.dot(xb, w_ref[...], preferred_element_type=jnp.float32)
        return (y + b_ref[...]).astype(jnp.bfloat16)      # (S, H) bf16

    q = proj(wq_ref, bq_ref)
    k = proj(wk_ref, bk_ref)
    v = proj(wv_ref, bv_ref)

    # (S, H) -> (nh, S, d) via leading-axis stack of contiguous head slices
    # (matches transpose_for_scores; no lane-axis concatenate anywhere).
    def split_heads(t):
        return jnp.stack([t[:, h * d:(h + 1) * d] for h in range(nh)], axis=0)

    q3, k3, v3 = split_heads(q), split_heads(k), split_heads(v)

    # Batched scores over all heads at once: (nh, S, S), f32 accumulation.
    scores = jnp.einsum('hqd,hkd->hqk', q3, k3,
                        preferred_element_type=jnp.float32)
    scores = scores * (1.0 / math.sqrt(d))
    if mask_ref is not None:
        # mask block is (1, 1, S): per-key additive mask, broadcast in VMEM.
        scores = scores + mask_ref[...].astype(jnp.float32)

    # Numerically stable softmax in f32; divide -> EUP reciprocal + multiply.
    m = jnp.max(scores, axis=-1, keepdims=True)
    p = jnp.exp(scores - m)
    denom = jnp.sum(p, axis=-1, keepdims=True)
    probs = p * pl.reciprocal(denom, approx=True)
    # attention-prob dropout is identity in eval mode.

    # Batched context: (nh, S, d), f32 accumulation.
    ctx3 = jnp.einsum('hqk,hkd->hqd', probs.astype(jnp.bfloat16), v3,
                      preferred_element_type=jnp.float32)

    # Output dense without rebuilding (S, H) via a lane concat:
    #   out = sum_h ctx_h @ wo[h*d:(h+1)*d, :]   with wo3 = wo.reshape(nh, d, H)
    out_h = jnp.einsum('hqd,hde->hqe', ctx3.astype(jnp.bfloat16), wo3_ref[...],
                       preferred_element_type=jnp.float32)     # (nh, S, H)
    out = jnp.sum(out_h, axis=0) + bo_ref[...]

    # GTSelfOutput: dropout (identity in eval) -> residual -> LayerNorm (f32).
    y = out + x32
    mean = jnp.mean(y, axis=-1, keepdims=True)
    var = jnp.mean(jnp.square(y - mean), axis=-1, keepdims=True)
    y = (y - mean) * jax.lax.rsqrt(var + eps)
    y = y * gamma_ref[...] + beta_ref[...]
    o_ref[0] = y.astype(o_ref.dtype)


def _kernel_with_mask(x_ref, mask_ref, *rest, num_heads, head_size, eps):
    _attention_body(x_ref, mask_ref, *rest,
                    num_heads=num_heads, head_size=head_size, eps=eps)


def _kernel_no_mask(x_ref, *rest, num_heads, head_size, eps):
    _attention_body(x_ref, None, *rest,
                    num_heads=num_heads, head_size=head_size, eps=eps)


def gt_attention(hidden_states, attention_mask, params, *, num_heads, eps=1e-12):
    """Fused GTAttention forward.  attention_mask: None or a per-key additive
    BERT mask broadcastable from (B, 1, 1, S)."""
    B, S, H = hidden_states.shape
    if H % num_heads != 0:
        raise ValueError(
            f"hidden size ({H}) is not a multiple of num_attention_heads ({num_heads})")
    d = H // num_heads

    # Weights -> bf16 MXU inputs (halves weight DMA too); wo pre-split per head.
    wq = params["wq"].astype(jnp.bfloat16)
    wk = params["wk"].astype(jnp.bfloat16)
    wv = params["wv"].astype(jnp.bfloat16)
    wo3 = params["wo"].astype(jnp.bfloat16).reshape(num_heads, d, H)
    bq = params["bq"].reshape(1, H).astype(jnp.float32)
    bk = params["bk"].reshape(1, H).astype(jnp.float32)
    bv = params["bv"].reshape(1, H).astype(jnp.float32)
    bo = params["bo"].reshape(1, H).astype(jnp.float32)
    gamma = params["gamma"].reshape(1, H).astype(jnp.float32)
    beta = params["beta"].reshape(1, H).astype(jnp.float32)

    const2 = lambda b: (0, 0)
    const3 = lambda b: (0, 0, 0)
    w_spec = pl.BlockSpec((H, H), const2)           # constant index_map:
    b_spec = pl.BlockSpec((1, H), const2)           #   DMA'd once per core,
    wo3_spec = pl.BlockSpec((num_heads, d, H), const3)  # not per grid step.

    in_specs = [pl.BlockSpec((1, S, H), lambda b: (b, 0, 0))]
    args = [hidden_states]
    if attention_mask is not None:
        mask = jnp.asarray(attention_mask).astype(jnp.float32)
        if mask.size != B * S:
            raise ValueError("attention_mask must be a per-key additive mask "
                             "broadcastable from shape (B, 1, 1, S)")
        mask = mask.reshape(B, 1, S)
        in_specs.append(pl.BlockSpec((1, 1, S), lambda b: (b, 0, 0)))
        args.append(mask)
        kernel_fn = _kernel_with_mask
    else:
        kernel_fn = _kernel_no_mask

    in_specs += [w_spec, b_spec, w_spec, b_spec, w_spec, b_spec,
                 wo3_spec, b_spec, b_spec, b_spec]
    args += [wq, bq, wk, bk, wv, bv, wo3, bo, gamma, beta]

    kernel = functools.partial(kernel_fn, num_heads=num_heads,
                               head_size=d, eps=eps)

    # NOTE: for long sequences / BERT-scale H, tile S (flash-style online
    # softmax over key tiles) and pin the weights in persistent VMEM so the
    # per-step working set fits v7x's 64 MiB VMEM; at S=8, H=32 everything
    # fits in a few tens of KB and defaults are ample.
    return pl.pallas_call(
        kernel,
        out_shape=jax.ShapeDtypeStruct((B, S, H), hidden_states.dtype),
        grid_spec=pltpu.PrefetchScalarGridSpec(
            num_scalar_prefetch=0,
            grid=(B,),
            in_specs=in_specs,
            out_specs=pl.BlockSpec((1, S, H), lambda b: (b, 0, 0)),
        ),
        compiler_params=pltpu.CompilerParams(
            dimension_semantics=("parallel",)),
    )(*args)


def gt_attention_ref(x, mask, params, *, num_heads, eps=1e-12):
    """Pure-JAX f32 reference matching the PyTorch module in eval mode."""
    B, S, H = x.shape
    d = H // num_heads
    q = x @ params["wq"] + params["bq"].reshape(H)
    k = x @ params["wk"] + params["bk"].reshape(H)
    v = x @ params["wv"] + params["bv"].reshape(H)

    def split(t):
        return t.reshape(B, S, num_heads, d).transpose(0, 2, 1, 3)

    qh, kh, vh = split(q), split(k), split(v)
    scores = jnp.einsum("bhqd,bhkd->bhqk", qh, kh) / math.sqrt(d)
    if mask is not None:
        scores = scores + mask
    probs = jax.nn.softmax(scores, axis=-1)
    ctx = jnp.einsum("bhqk,bhkd->bhqd", probs, vh)
    ctx = ctx.transpose(0, 2, 1, 3).reshape(B, S, H)
    out = ctx @ params["wo"] + params["bo"].reshape(H)
    y = out + x
    mean = jnp.mean(y, axis=-1, keepdims=True)
    var = jnp.mean((y - mean) ** 2, axis=-1, keepdims=True)
    y = (y - mean) / jnp.sqrt(var + eps)
    return y * params["gamma"].reshape(H) + params["beta"].reshape(H)


if __name__ == "__main__":
    # config: hidden_size=32, num_attention_heads=4, layer_norm_eps=1e-12
    B, S, H = 2, 8, 32
    NUM_HEADS = 4
    EPS = 1e-12

    key = jax.random.PRNGKey(0)
    keys = jax.random.split(key, 12)

    def init_w(k):
        return jax.random.normal(k, (H, H), dtype=jnp.float32) * 0.1

    params = {
        "wq": init_w(keys[0]),
        "bq": jax.random.normal(keys[1], (1, H), dtype=jnp.float32) * 0.1,
        "wk": init_w(keys[2]),
        "bk": jax.random.normal(keys[3], (1, H), dtype=jnp.float32) * 0.1,
        "wv": init_w(keys[4]),
        "bv": jax.random.normal(keys[5], (1, H), dtype=jnp.float32) * 0.1,
        "wo": init_w(keys[6]),
        "bo": jax.random.normal(keys[7], (1, H), dtype=jnp.float32) * 0.1,
        "gamma": jnp.ones((1, H), dtype=jnp.float32),
        "beta": jnp.zeros((1, H), dtype=jnp.float32),
    }

    x = jax.random.normal(keys[8], (B, S, H), dtype=jnp.float32)

    # BERT-style additive mask (B, 1, 1, S): keep all keys in batch 0,
    # mask out the last 3 key positions in batch 1.
    keep = jnp.ones((B, S), dtype=jnp.float32).at[1, 5:].set(0.0)
    attn_mask = (1.0 - keep)[:, None, None, :] * -10000.0

    # Masked path (kernel uses bf16 MXU inputs + approx reciprocal -> compare
    # against the f32 reference with a correspondingly relaxed tolerance).
    out = jax.block_until_ready(
        gt_attention(x, attn_mask, params, num_heads=NUM_HEADS, eps=EPS))
    ref = gt_attention_ref(x, attn_mask, params, num_heads=NUM_HEADS, eps=EPS)
    assert out.shape == (B, S, H)
    assert jnp.allclose(out, ref, atol=2e-2, rtol=2e-2), "mismatch vs reference (masked)"

    # No-mask path: the mask input is skipped entirely (no dense zeros streamed).
    out_nm = jax.block_until_ready(
        gt_attention(x, None, params, num_heads=NUM_HEADS, eps=EPS))
    ref_nm = gt_attention_ref(x, None, params, num_heads=NUM_HEADS, eps=EPS)
    assert jnp.allclose(out_nm, ref_nm, atol=2e-2, rtol=2e-2), "mismatch vs reference (no mask)"

    print("KERNEL_OK")
</pallas_src>

<mosaic_0001>
module attributes {stable_mosaic.version = 11 : i64} {
  func.func @_kernel_with_mask(%arg0: i32, %arg1: memref<1x8x32xf32, #tpu.memory_space<vmem>>, %arg2: memref<1x1x8xf32, #tpu.memory_space<vmem>>, %arg3: memref<32x32xbf16, #tpu.memory_space<vmem>>, %arg4: memref<1x32xf32, #tpu.memory_space<vmem>>, %arg5: memref<32x32xbf16, #tpu.memory_space<vmem>>, %arg6: memref<1x32xf32, #tpu.memory_space<vmem>>, %arg7: memref<32x32xbf16, #tpu.memory_space<vmem>>, %arg8: memref<1x32xf32, #tpu.memory_space<vmem>>, %arg9: memref<4x8x32xbf16, #tpu.memory_space<vmem>>, %arg10: memref<1x32xf32, #tpu.memory_space<vmem>>, %arg11: memref<1x32xf32, #tpu.memory_space<vmem>>, %arg12: memref<1x32xf32, #tpu.memory_space<vmem>>, %arg13: memref<1x8x32xf32, #tpu.memory_space<vmem>>) attributes {dimension_semantics = [#tpu.dimension_semantics<parallel>], iteration_bounds = array<i64: 2>, scalar_prefetch = 0 : i64, scratch_operands = 0 : i64, tpu.core_type = #tpu.core_type<tc>, window_params = [{transform_indices = @transform_0, window_bounds = array<i64: 1, 8, 32>}, {transform_indices = @transform_1, window_bounds = array<i64: 1, 1, 8>}, {pipeline_mode = #tpu.pipeline_mode<synchronous>, transform_indices = @transform_2, window_bounds = array<i64: 32, 32>}, {pipeline_mode = #tpu.pipeline_mode<synchronous>, transform_indices = @transform_3, window_bounds = array<i64: 1, 32>}, {pipeline_mode = #tpu.pipeline_mode<synchronous>, transform_indices = @transform_4, window_bounds = array<i64: 32, 32>}, {pipeline_mode = #tpu.pipeline_mode<synchronous>, transform_indices = @transform_5, window_bounds = array<i64: 1, 32>}, {pipeline_mode = #tpu.pipeline_mode<synchronous>, transform_indices = @transform_6, window_bounds = array<i64: 32, 32>}, {pipeline_mode = #tpu.pipeline_mode<synchronous>, transform_indices = @transform_7, window_bounds = array<i64: 1, 32>}, {pipeline_mode = #tpu.pipeline_mode<synchronous>, transform_indices = @transform_8, window_bounds = array<i64: 4, 8, 32>}, {pipeline_mode = #tpu.pipeline_mode<synchronous>, transform_indices = @transform_9, window_bounds = array<i64: 1, 32>}, {pipeline_mode = #tpu.pipeline_mode<synchronous>, transform_indices = @transform_10, window_bounds = array<i64: 1, 32>}, {pipeline_mode = #tpu.pipeline_mode<synchronous>, transform_indices = @transform_11, window_bounds = array<i64: 1, 32>}, {transform_indices = @transform_12, window_bounds = array<i64: 1, 8, 32>}]} {
    %c0 = arith.constant 0 : index
    %c0_0 = arith.constant 0 : index
    %c0_1 = arith.constant 0 : index
    %0 = vector.load %arg1[%c0, %c0_0, %c0_1] : memref<1x8x32xf32, #tpu.memory_space<vmem>>, vector<1x8x32xf32>
    %1 = vector.shape_cast %0 : vector<1x8x32xf32> to vector<8x32xf32>
    %2 = arith.truncf %1 : vector<8x32xf32> to vector<8x32xbf16>
    %c0_2 = arith.constant 0 : index
    %c0_3 = arith.constant 0 : index
    %3 = vector.load %arg3[%c0_2, %c0_3] : memref<32x32xbf16, #tpu.memory_space<vmem>>, vector<32x32xbf16>
    %cst = arith.constant dense<0.000000e+00> : vector<8x32xf32>
    %4 = tpu.matmul %2, %3, %cst {dimension_numbers = #tpu.dot_dimension_numbers<[1], [0], [0], [1], [0, 0, 1, 1], [], []>} : vector<8x32xbf16>, vector<32x32xbf16>, vector<8x32xf32> -> vector<8x32xf32>
    %c0_4 = arith.constant 0 : index
    %c0_5 = arith.constant 0 : index
    %5 = vector.load %arg4[%c0_4, %c0_5] : memref<1x32xf32, #tpu.memory_space<vmem>>, vector<1x32xf32>
    %6 = vector.broadcast %5 : vector<1x32xf32> to vector<8x32xf32>
    %7 = arith.addf %4, %6 : vector<8x32xf32>
    %8 = arith.truncf %7 : vector<8x32xf32> to vector<8x32xbf16>
    %c0_6 = arith.constant 0 : index
    %c0_7 = arith.constant 0 : index
    %9 = vector.load %arg5[%c0_6, %c0_7] : memref<32x32xbf16, #tpu.memory_space<vmem>>, vector<32x32xbf16>
    %cst_8 = arith.constant dense<0.000000e+00> : vector<8x32xf32>
    %10 = tpu.matmul %2, %9, %cst_8 {dimension_numbers = #tpu.dot_dimension_numbers<[1], [0], [0], [1], [0, 0, 1, 1], [], []>} : vector<8x32xbf16>, vector<32x32xbf16>, vector<8x32xf32> -> vector<8x32xf32>
    %c0_9 = arith.constant 0 : index
    %c0_10 = arith.constant 0 : index
    %11 = vector.load %arg6[%c0_9, %c0_10] : memref<1x32xf32, #tpu.memory_space<vmem>>, vector<1x32xf32>
    %12 = vector.broadcast %11 : vector<1x32xf32> to vector<8x32xf32>
    %13 = arith.addf %10, %12 : vector<8x32xf32>
    %14 = arith.truncf %13 : vector<8x32xf32> to vector<8x32xbf16>
    %c0_11 = arith.constant 0 : index
    %c0_12 = arith.constant 0 : index
    %15 = vector.load %arg7[%c0_11, %c0_12] : memref<32x32xbf16, #tpu.memory_space<vmem>>, vector<32x32xbf16>
    %cst_13 = arith.constant dense<0.000000e+00> : vector<8x32xf32>
    %16 = tpu.matmul %2, %15, %cst_13 {dimension_numbers = #tpu.dot_dimension_numbers<[1], [0], [0], [1], [0, 0, 1, 1], [], []>} : vector<8x32xbf16>, vector<32x32xbf16>, vector<8x32xf32> -> vector<8x32xf32>
    %c0_14 = arith.constant 0 : index
    %c0_15 = arith.constant 0 : index
    %17 = vector.load %arg8[%c0_14, %c0_15] : memref<1x32xf32, #tpu.memory_space<vmem>>, vector<1x32xf32>
    %18 = vector.broadcast %17 : vector<1x32xf32> to vector<8x32xf32>
    %19 = arith.addf %16, %18 : vector<8x32xf32>
    %20 = arith.truncf %19 : vector<8x32xf32> to vector<8x32xbf16>
    %21 = vector.extract_strided_slice %8 {offsets = [0, 0], sizes = [8, 8], strides = [1, 1]} : vector<8x32xbf16> to vector<8x8xbf16>
    %22 = vector.extract_strided_slice %8 {offsets = [0, 8], sizes = [8, 8], strides = [1, 1]} : vector<8x32xbf16> to vector<8x8xbf16>
    %23 = vector.extract_strided_slice %8 {offsets = [0, 16], sizes = [8, 8], strides = [1, 1]} : vector<8x32xbf16> to vector<8x8xbf16>
    %24 = vector.extract_strided_slice %8 {offsets = [0, 24], sizes = [8, 8], strides = [1, 1]} : vector<8x32xbf16> to vector<8x8xbf16>
    %25 = vector.shape_cast %21 : vector<8x8xbf16> to vector<1x8x8xbf16>
    %26 = vector.shape_cast %22 : vector<8x8xbf16> to vector<1x8x8xbf16>
    %27 = vector.shape_cast %23 : vector<8x8xbf16> to vector<1x8x8xbf16>
    %28 = vector.shape_cast %24 : vector<8x8xbf16> to vector<1x8x8xbf16>
    %29 = tpu.concatenate %25, %26, %27, %28 in 0 : vector<1x8x8xbf16>, vector<1x8x8xbf16>, vector<1x8x8xbf16>, vector<1x8x8xbf16> -> vector<4x8x8xbf16>
    %30 = vector.extract_strided_slice %14 {offsets = [0, 0], sizes = [8, 8], strides = [1, 1]} : vector<8x32xbf16> to vector<8x8xbf16>
    %31 = vector.extract_strided_slice %14 {offsets = [0, 8], sizes = [8, 8], strides = [1, 1]} : vector<8x32xbf16> to vector<8x8xbf16>
    %32 = vector.extract_strided_slice %14 {offsets = [0, 16], sizes = [8, 8], strides = [1, 1]} : vector<8x32xbf16> to vector<8x8xbf16>
    %33 = vector.extract_strided_slice %14 {offsets = [0, 24], sizes = [8, 8], strides = [1, 1]} : vector<8x32xbf16> to vector<8x8xbf16>
    %34 = vector.shape_cast %30 : vector<8x8xbf16> to vector<1x8x8xbf16>
    %35 = vector.shape_cast %31 : vector<8x8xbf16> to vector<1x8x8xbf16>
    %36 = vector.shape_cast %32 : vector<8x8xbf16> to vector<1x8x8xbf16>
    %37 = vector.shape_cast %33 : vector<8x8xbf16> to vector<1x8x8xbf16>
    %38 = tpu.concatenate %34, %35, %36, %37 in 0 : vector<1x8x8xbf16>, vector<1x8x8xbf16>, vector<1x8x8xbf16>, vector<1x8x8xbf16> -> vector<4x8x8xbf16>
    %39 = vector.extract_strided_slice %20 {offsets = [0, 0], sizes = [8, 8], strides = [1, 1]} : vector<8x32xbf16> to vector<8x8xbf16>
    %40 = vector.extract_strided_slice %20 {offsets = [0, 8], sizes = [8, 8], strides = [1, 1]} : vector<8x32xbf16> to vector<8x8xbf16>
    %41 = vector.extract_strided_slice %20 {offsets = [0, 16], sizes = [8, 8], strides = [1, 1]} : vector<8x32xbf16> to vector<8x8xbf16>
    %42 = vector.extract_strided_slice %20 {offsets = [0, 24], sizes = [8, 8], strides = [1, 1]} : vector<8x32xbf16> to vector<8x8xbf16>
    %43 = vector.shape_cast %39 : vector<8x8xbf16> to vector<1x8x8xbf16>
    %44 = vector.shape_cast %40 : vector<8x8xbf16> to vector<1x8x8xbf16>
    %45 = vector.shape_cast %41 : vector<8x8xbf16> to vector<1x8x8xbf16>
    %46 = vector.shape_cast %42 : vector<8x8xbf16> to vector<1x8x8xbf16>
    %47 = tpu.concatenate %43, %44, %45, %46 in 0 : vector<1x8x8xbf16>, vector<1x8x8xbf16>, vector<1x8x8xbf16>, vector<1x8x8xbf16> -> vector<4x8x8xbf16>
    "tpu.trace_start"() <{level = 10 : i32, message = "hqd,hkd->hqk"}> : () -> ()
    %cst_16 = arith.constant dense<0.000000e+00> : vector<4x8x8xf32>
    %48 = tpu.matmul %29, %38, %cst_16 {dimension_numbers = #tpu.dot_dimension_numbers<[2], [2], [1], [1], [0, 0, 0, 1, 1, 1], [0], [0]>} : vector<4x8x8xbf16>, vector<4x8x8xbf16>, vector<4x8x8xf32> -> vector<4x8x8xf32>
    "tpu.trace_stop"() : () -> ()
    %cst_17 = arith.constant 0.353553385 : f32
    %49 = vector.broadcast %cst_17 : f32 to vector<4x8x8xf32>
    %50 = arith.mulf %48, %49 : vector<4x8x8xf32>
    %c0_18 = arith.constant 0 : index
    %c0_19 = arith.constant 0 : index
    %c0_20 = arith.constant 0 : index
    %51 = vector.load %arg2[%c0_18, %c0_19, %c0_20] : memref<1x1x8xf32, #tpu.memory_space<vmem>>, vector<1x1x8xf32>
    %52 = vector.broadcast %51 : vector<1x1x8xf32> to vector<4x8x8xf32>
    %53 = arith.addf %50, %52 : vector<4x8x8xf32>
    %cst_21 = arith.constant dense<0xFF800000> : vector<4x8xf32>
    %54 = vector.multi_reduction <maximumf>, %53, %cst_21 [2] : vector<4x8x8xf32> to vector<4x8xf32>
    %55 = vector.shape_cast %54 : vector<4x8xf32> to vector<4x8x1xf32>
    %56 = vector.broadcast %55 : vector<4x8x1xf32> to vector<4x8x8xf32>
    %57 = arith.subf %53, %56 : vector<4x8x8xf32>
    %58 = math.exp %57 : vector<4x8x8xf32>
    %cst_22 = arith.constant dense<0.000000e+00> : vector<4x8xf32>
    %59 = vector.multi_reduction <add>, %58, %cst_22 [2] : vector<4x8x8xf32> to vector<4x8xf32>
    %60 = vector.shape_cast %59 : vector<4x8xf32> to vector<4x8x1xf32>
    %61 = tpu.reciprocal %60 {approx = true} : vector<4x8x1xf32> -> vector<4x8x1xf32>
    %62 = vector.broadcast %61 : vector<4x8x1xf32> to vector<4x8x8xf32>
    %63 = arith.mulf %58, %62 : vector<4x8x8xf32>
    %64 = arith.truncf %63 : vector<4x8x8xf32> to vector<4x8x8xbf16>
    "tpu.trace_start"() <{level = 10 : i32, message = "hqk,hkd->hqd"}> : () -> ()
    %cst_23 = arith.constant dense<0.000000e+00> : vector<4x8x8xf32>
    %65 = tpu.matmul %64, %47, %cst_23 {dimension_numbers = #tpu.dot_dimension_numbers<[2], [1], [1], [2], [0, 0, 0, 1, 1, 2], [0], [0]>} : vector<4x8x8xbf16>, vector<4x8x8xbf16>, vector<4x8x8xf32> -> vector<4x8x8xf32>
    "tpu.trace_stop"() : () -> ()
    %66 = arith.truncf %65 : vector<4x8x8xf32> to vector<4x8x8xbf16>
    %c0_24 = arith.constant 0 : index
    %c0_25 = arith.constant 0 : index
    %c0_26 = arith.constant 0 : index
    %67 = vector.load %arg9[%c0_24, %c0_25, %c0_26] : memref<4x8x32xbf16, #tpu.memory_space<vmem>>, vector<4x8x32xbf16>
    "tpu.trace_start"() <{level = 10 : i32, message = "hqd,hde->hqe"}> : () -> ()
    %cst_27 = arith.constant dense<0.000000e+00> : vector<4x8x32xf32>
    %68 = tpu.matmul %66, %67, %cst_27 {dimension_numbers = #tpu.dot_dimension_numbers<[2], [1], [1], [2], [0, 0, 0, 1, 1, 2], [0], [0]>} : vector<4x8x8xbf16>, vector<4x8x32xbf16>, vector<4x8x32xf32> -> vector<4x8x32xf32>
    "tpu.trace_stop"() : () -> ()
    %cst_28 = arith.constant dense<0.000000e+00> : vector<8x32xf32>
    %69 = vector.multi_reduction <add>, %68, %cst_28 [0] : vector<4x8x32xf32> to vector<8x32xf32>
    %c0_29 = arith.constant 0 : index
    %c0_30 = arith.constant 0 : index
    %70 = vector.load %arg10[%c0_29, %c0_30] : memref<1x32xf32, #tpu.memory_space<vmem>>, vector<1x32xf32>
    %71 = vector.broadcast %70 : vector<1x32xf32> to vector<8x32xf32>
    %72 = arith.addf %69, %71 : vector<8x32xf32>
    %73 = arith.addf %72, %1 : vector<8x32xf32>
    %cst_31 = arith.constant dense<0.000000e+00> : vector<8xf32>
    %74 = vector.multi_reduction <add>, %73, %cst_31 [1] : vector<8x32xf32> to vector<8xf32>
    %75 = vector.shape_cast %74 : vector<8xf32> to vector<8x1xf32>
    %cst_32 = arith.constant 3.200000e+01 : f32
    %76 = vector.broadcast %cst_32 : f32 to vector<8x1xf32>
    %77 = arith.divf %75, %76 : vector<8x1xf32>
    %78 = vector.broadcast %77 : vector<8x1xf32> to vector<8x32xf32>
    %79 = arith.subf %73, %78 : vector<8x32xf32>
    %80 = arith.mulf %79, %79 : vector<8x32xf32>
    %cst_33 = arith.constant dense<0.000000e+00> : vector<8xf32>
    %81 = vector.multi_reduction <add>, %80, %cst_33 [1] : vector<8x32xf32> to vector<8xf32>
    %82 = vector.shape_cast %81 : vector<8xf32> to vector<8x1xf32>
    %cst_34 = arith.constant 3.200000e+01 : f32
    %83 = vector.broadcast %cst_34 : f32 to vector<8x1xf32>
    %84 = arith.divf %82, %83 : vector<8x1xf32>
    %85 = vector.broadcast %77 : vector<8x1xf32> to vector<8x32xf32>
    %86 = arith.subf %73, %85 : vector<8x32xf32>
    %cst_35 = arith.constant 9.99999996E-13 : f32
    %87 = vector.broadcast %cst_35 : f32 to vector<8x1xf32>
    %88 = arith.addf %84, %87 : vector<8x1xf32>
    %89 = math.rsqrt %88 : vector<8x1xf32>
    %90 = vector.broadcast %89 : vector<8x1xf32> to vector<8x32xf32>
    %91 = arith.mulf %86, %90 : vector<8x32xf32>
    %c0_36 = arith.constant 0 : index
    %c0_37 = arith.constant 0 : index
    %92 = vector.load %arg11[%c0_36, %c0_37] : memref<1x32xf32, #tpu.memory_space<vmem>>, vector<1x32xf32>
    %93 = vector.broadcast %92 : vector<1x32xf32> to vector<8x32xf32>
    %94 = arith.mulf %91, %93 : vector<8x32xf32>
    %c0_38 = arith.constant 0 : index
    %c0_39 = arith.constant 0 : index
    %95 = vector.load %arg12[%c0_38, %c0_39] : memref<1x32xf32, #tpu.memory_space<vmem>>, vector<1x32xf32>
    %96 = vector.broadcast %95 : vector<1x32xf32> to vector<8x32xf32>
    %97 = arith.addf %94, %96 : vector<8x32xf32>
    %c0_40 = arith.constant 0 : index
    %c0_41 = arith.constant 0 : index
    %c0_42 = arith.constant 0 : index
    %98 = vector.load %arg13[%c0_40, %c0_41, %c0_42] : memref<1x8x32xf32, #tpu.memory_space<vmem>>, vector<1x8x32xf32>
    %99 = vector.shape_cast %98 : vector<1x8x32xf32> to vector<8x32xf32>
    %100 = vector.shape_cast %97 : vector<8x32xf32> to vector<1x8x32xf32>
    tpu.vector_store %arg13[%c0_40, %c0_41, %c0_42], %100 {strides = array<i32>} : memref<1x8x32xf32, #tpu.memory_space<vmem>>, vector<1x8x32xf32>,
    return
  }
  func.func @transform_0(%arg0: i32) -> (i32, i32, i32) {
    %c0_i32 = arith.constant 0 : i32
    %c0_i32_0 = arith.constant 0 : i32
    %c0_i32_1 = arith.constant 0 : i32
    return %arg0, %c0_i32, %c0_i32_0 : i32, i32, i32
  }
  func.func @transform_1(%arg0: i32) -> (i32, i32, i32) {
    %c0_i32 = arith.constant 0 : i32
    %c0_i32_0 = arith.constant 0 : i32
    %c0_i32_1 = arith.constant 0 : i32
    return %arg0, %c0_i32, %c0_i32_0 : i32, i32, i32
  }
  func.func @transform_2(%arg0: i32) -> (i32, i32) {
    %c0_i32 = arith.constant 0 : i32
    %c0_i32_0 = arith.constant 0 : i32
    %c0_i32_1 = arith.constant 0 : i32
    return %c0_i32, %c0_i32_0 : i32, i32
  }
  func.func @transform_3(%arg0: i32) -> (i32, i32) {
    %c0_i32 = arith.constant 0 : i32
    %c0_i32_0 = arith.constant 0 : i32
    %c0_i32_1 = arith.constant 0 : i32
    return %c0_i32, %c0_i32_0 : i32, i32
  }
  func.func @transform_4(%arg0: i32) -> (i32, i32) {
    %c0_i32 = arith.constant 0 : i32
    %c0_i32_0 = arith.constant 0 : i32
    %c0_i32_1 = arith.constant 0 : i32
    return %c0_i32, %c0_i32_0 : i32, i32
  }
  func.func @transform_5(%arg0: i32) -> (i32, i32) {
    %c0_i32 = arith.constant 0 : i32
    %c0_i32_0 = arith.constant 0 : i32
    %c0_i32_1 = arith.constant 0 : i32
    return %c0_i32, %c0_i32_0 : i32, i32
  }
  func.func @transform_6(%arg0: i32) -> (i32, i32) {
    %c0_i32 = arith.constant 0 : i32
    %c0_i32_0 = arith.constant 0 : i32
    %c0_i32_1 = arith.constant 0 : i32
    return %c0_i32, %c0_i32_0 : i32, i32
  }
  func.func @transform_7(%arg0: i32) -> (i32, i32) {
    %c0_i32 = arith.constant 0 : i32
    %c0_i32_0 = arith.constant 0 : i32
    %c0_i32_1 = arith.constant 0 : i32
    return %c0_i32, %c0_i32_0 : i32, i32
  }
  func.func @transform_8(%arg0: i32) -> (i32, i32, i32) {
    %c0_i32 = arith.constant 0 : i32
    %c0_i32_0 = arith.constant 0 : i32
    %c0_i32_1 = arith.constant 0 : i32
    %c0_i32_2 = arith.constant 0 : i32
    return %c0_i32, %c0_i32_0, %c0_i32_1 : i32, i32, i32
  }
  func.func @transform_9(%arg0: i32) -> (i32, i32) {
    %c0_i32 = arith.constant 0 : i32
    %c0_i32_0 = arith.constant 0 : i32
    %c0_i32_1 = arith.constant 0 : i32
    return %c0_i32, %c0_i32_0 : i32, i32
  }
  func.func @transform_10(%arg0: i32) -> (i32, i32) {
    %c0_i32 = arith.constant 0 : i32
    %c0_i32_0 = arith.constant 0 : i32
    %c0_i32_1 = arith.constant 0 : i32
    return %c0_i32, %c0_i32_0 : i32, i32
  }
  func.func @transform_11(%arg0: i32) -> (i32, i32) {
    %c0_i32 = arith.constant 0 : i32
    %c0_i32_0 = arith.constant 0 : i32
    %c0_i32_1 = arith.constant 0 : i32
    return %c0_i32, %c0_i32_0 : i32, i32
  }
  func.func @transform_12(%arg0: i32) -> (i32, i32, i32) {
    %c0_i32 = arith.constant 0 : i32
    %c0_i32_0 = arith.constant 0 : i32
    %c0_i32_1 = arith.constant 0 : i32
    return %arg0, %c0_i32, %c0_i32_0 : i32, i32, i32
  }
}

</mosaic_0001>

<bundles_post_ra>
// kernel: tpu_custom_call.1
= control target key start
LH: loop header
LB: loop body
LE: loop exit
PB: predicated region body
PF: predicated region fallthrough
CT: control target
= control target key end

     0   :  { %s2457_s0 = inlined_call_operand.hbm [shape: f32[2,8,32], index: 0, kind: input, shape index: {}]   ;;  %s2458_s1 = inlined_call_operand.vmem [shape: f32[2,1,8], index: 1, kind: input, shape index: {}]   ;;  %s2459_s2 = inlined_call_operand.hbm [shape: bf16[32,32], index: 2, kind: input, shape index: {}]   ;;  %s2460_s3 = inlined_call_operand.vmem [shape: f32[1,32], index: 3, kind: input, shape index: {}]   ;;  %s2461_s4 = inlined_call_operand.hbm [shape: bf16[32,32], index: 4, kind: input, shape index: {}]   ;;  %s2462_s5 = inlined_call_operand.vmem [shape: f32[1,32], index: 5, kind: input, shape index: {}]   ;;  %s2463_s6 = inlined_call_operand.vmem [shape: bf16[32,32], index: 6, kind: input, shape index: {}]   ;;  %s2464_s7 = inlined_call_operand.vmem [shape: f32[1,32], index: 7, kind: input, shape index: {}]   ;;  %s2465_s8 = inlined_call_operand.hbm [shape: bf16[4,8,32], index: 8, kind: input, shape index: {}]   ;;  %s2466_s9 = inlined_call_operand.vmem [shape: f32[1,32], index: 9, kind: input, shape index: {}]   ;;  %s2467_s10 = inlined_call_operand.vmem [shape: f32[1,32], index: 10, kind: input, shape index: {}]   ;;  %s2468_s11 = inlined_call_operand.vmem [shape: f32[1,32], index: 11, kind: input, shape index: {}]   ;;  %s2469_s12 = inlined_call_operand.hbm [shape: f32[2,8,32], index: 12, kind: output, shape index: {}]  }
   0x1   :  { %2476 = sst [smem:[#allocation17_spill]] %s2466_s9 }
   0x2   :  { %2477 = sst [smem:[#allocation18_spill]] %s2467_s10 }
   0x3   :  { %2478 = sst [smem:[#allocation19_spill]] %s2468_s11 }
   0x4   :  { %2479 = sst [smem:[#allocation20_spill]] %s2469_s12 }
   0x5   :  { %17 = vsyncpa [#allocation3], 0 }
   0x6   :  { %19 = vsyncpa [#allocation3 + $0x1], 0 }
   0x7   :  { %20 = vsyncpa [#allocation6], 0 }
   0x8   :  { %21 = vsyncpa [#allocation9], 0 }
   0x9   :  { %22 = vsyncpa [#allocation4], 0 }
   0xa   :  { %24 = vsyncpa [#allocation4 + $0x1], 0  ;;  %s2051_s21 = smov 0   ;;  %s2053_s22 = smov 0  }
   0xb   :  { %s2055_s23 = smov 0   ;;  %s2057_s24 = smov 0  }
   0xc LB: > { %2480 = sst [smem:[#allocation15_spill]] %s1960_s21  ;;  %s2072_s25 = sadd.s32 4294967295, %s1972_s24   ;;  %s1972_s24 = sphi %s2057_s24, %s2508_s24   ;;  %s1968_s23 = sphi %s2055_s23, %s2507_s23   ;;  %s1964_s22 = sphi %s2053_s22, %s2506_s22   ;;  %s1960_s21 = sphi %s2051_s21, %s2505_s21  }
   0xd   : > { %s1501_s26 = sadd.s32 4294967294, %s1972_s24   ;;  %p50_p0 = scmp.ne.s32.totalorder %s1964_s22, %s1960_s21 }
   0xe   : > { %p2472_p1 = scmp.eq.s32.totalorder %s2072_s25, 0  ;;  %p316_p3 = scmp.eq.s32.totalorder %s1501_s26, 1 }
   0xf   : > { %p1502_p5 = scmp.ge.s32.totalorder %s1972_s24, 1  ;;  %p323_p7 = scmp.lt.s32.totalorder %s1972_s24, 3 }
  0x10   : > { %p2081_p4 = por %p2472_p1, %p50_p0  ;;  %p2086_p6 = por %p316_p3, %p50_p0 }
  0x11   : > { %p2091_p8 = pnand %p1502_p5, %p323_p7  ;;  %s1974_s30 = smov [#allocation5]  }
  0x12   : > { %s2481_s27 = scalar_select %p2081_p4, 1, 0 }
  0x13   : > { %s2482_s28 = scalar_select %p2086_p6, 1, 0 }
  0x14   : > { %s2484_s29 = scalar_select %p2091_p8, 1, 0 }
  0x15   : > { %2483 = sst [smem:[#allocation16_spill]] %s2482_s28  ;;  %s335_s13 = sshll.u32 %s1974_s30, 4  ;;  %s2095_s13 = int_to_ptr.vmem [resolvable:$true] %s335_s13 }
  0x16   : > { %p1692_p9 = pneg %p2091_p8  ;;  %s1975_s15 = smov [#allocation7]  }
  0x17   : > { %s351_s16 = sshll.u32 %s1975_s15, 4  ;;  %s1976_s17 = smov [#allocation8]   ;;  %s2106_s16 = int_to_ptr.vmem [resolvable:$true] %s351_s16 }
  0x18   : > { %p2102_p11 = pnand %p1692_p9, %p2472_p1  ;;  %s2108_s18 = sshll.u32 %s1976_s17, 4  ;;  %s374_s18 = int_to_ptr.vmem [resolvable:$true] %s2108_s18 }
  0x19   : > { %s1784_s26 = scalar_lea.hbm %s2459_s2, 256 }
  0x1a   : > { %p1785_p12 = scmp.ne.s32.totalorder %s2459_s2, %s1784_s26  ;;  %p2118_p13 = pneg %p2102_p11 }
  0x1b   : > { %p1791_p5 = scmp.lt.u32.totalorder %s1784_s26, %s2459_s2 }
  0x1c   : > { %p1787_p0 = pnand %p2118_p13, %p1785_p12 }
  0x1e   : > { %p1788_p3 = pneg %p1787_p0 }
  0x20   : > { %p1793_p7 = pnand %p1791_p5, %p1788_p3 }
  0x22   : > { %1796 = shalt.err (!%p1793_p7)
}
  0x23   : > { %s1797_s28 = scalar_lea.vmem %s2095_s13, 256  ;;  %p1805_p2 = scmp.lt.s32.totalorder %s2095_s13, %s2095_s13 }
  0x24   : > { %p1798_p9 = scmp.ne.s32.totalorder %s2095_s13, %s1797_s28  ;;  %p1806_p6 = scmp.lt.s32.totalorder %s1797_s28, %s1797_s28 }
  0x26   : > { %p1800_p10 = pnand %p1798_p9, %p2118_p13  ;;  %p1807_p12 = por %p1806_p6, %p1805_p2 }
  0x28   : > { %p1801_p1 = pneg %p1800_p10 }
  0x2a   : > { %p1808_p0 = pnand %p1807_p12, %p1801_p1 }
  0x2c   : > { %1811 = shalt.err (!%p1808_p0)
}
  0x2d   : > { %s1977_s19 = smov 64   ;;  %s1978_s20 = smov 4  }
  0x2e   : > { %1695 = dma.hbm_to_vmem [thread:$0]  (!%p2102_p11), %s2459_s2, 256, %s2095_s13, [#allocation6], %s1977_s19, %s1977_s19, %s1978_s20  }
  0x2f   : > { %s1812_s28 = scalar_lea.hbm %s2461_s4, 256 }
  0x30   : > { %p1813_p1 = scmp.ne.s32.totalorder %s2461_s4, %s1812_s28  ;;  %p1819_p10 = scmp.lt.u32.totalorder %s1812_s28, %s2461_s4 }
  0x32   : > { %p1815_p2 = pnand %p1813_p1, %p2118_p13 }
  0x34   : > { %p1816_p6 = pneg %p1815_p2 }
  0x36   : > { %p1821_p3 = pnand %p1819_p10, %p1816_p6 }
  0x38   : > { %1824 = shalt.err (!%p1821_p3)
}
  0x39   : > { %s1825_s13 = scalar_lea.vmem %s2106_s16, 256  ;;  %p1833_p12 = scmp.lt.s32.totalorder %s2106_s16, %s2106_s16 }
  0x3a   : > { %p1826_p5 = scmp.ne.s32.totalorder %s2106_s16, %s1825_s13  ;;  %p1834_p0 = scmp.lt.s32.totalorder %s1825_s13, %s1825_s13 }
  0x3c   : > { %p1828_p7 = pnand %p1826_p5, %p2118_p13  ;;  %p1835_p1 = por %p1834_p0, %p1833_p12 }
  0x3e   : > { %p1829_p9 = pneg %p1828_p7 }
  0x40   : > { %p1836_p2 = pnand %p1835_p1, %p1829_p9 }
  0x42   : > { %1839 = shalt.err (!%p1836_p2)
}
  0x43   : > { %1698 = dma.hbm_to_vmem [thread:$0]  (!%p2102_p11), %s2461_s4, 256, %s2106_s16, [#allocation6], %s1977_s19, %s1977_s19, %s1978_s20  }
  0x44   : > { %s1840_s26 = scalar_lea.hbm %s2465_s8, 256 }
  0x45   : > { %p1841_p6 = scmp.ne.s32.totalorder %s2465_s8, %s1840_s26  ;;  %p1847_p5 = scmp.lt.u32.totalorder %s1840_s26, %s2465_s8 }
  0x47   : > { %p1843_p10 = pnand %p1841_p6, %p2118_p13 }
  0x49   : > { %p1844_p3 = pneg %p1843_p10 }
  0x4b   : > { %p1849_p7 = pnand %p1847_p5, %p1844_p3 }
  0x4d   : > { %1852 = shalt.err (!%p1849_p7)
}
  0x4e   : > { %s1853_s13 = scalar_lea.vmem %s374_s18, 256  ;;  %p1861_p1 = scmp.lt.s32.totalorder %s374_s18, %s374_s18 }
  0x4f   : > { %p1854_p9 = scmp.ne.s32.totalorder %s374_s18, %s1853_s13  ;;  %p1862_p2 = scmp.lt.s32.totalorder %s1853_s13, %s1853_s13 }
  0x51   : > { %p1856_p12 = pnand %p1854_p9, %p2118_p13  ;;  %p1863_p4 = por %p1862_p2, %p1861_p1 }
  0x53   : > { %p1857_p0 = pneg %p1856_p12 }
  0x55   : > { %p1864_p8 = pnand %p1863_p4, %p1857_p0 }
  0x57   : > { %1867 = shalt.err (!%p1864_p8)
}
  0x58   : > { %1701 = dma.hbm_to_vmem [thread:$0]  (!%p2102_p11), %s2465_s8, 256, %s374_s18, [#allocation9], %s1977_s19, %s1977_s19, %s1978_s20  }
  0x59   : > { %s2191_s21 = sadd.s32 1, %s1972_s24   ;;  %s37_s10 = sadd.s32 1, %s1968_s23 }
  0x5a   : > { %s34_s14 = ssub.s32 %s1972_s24, %s2191_s21  ;;  %p44_p8 = scmp.ne.s32.totalorder %s1968_s23, %s1964_s22 }
  0x5b   : > { %p35_p4 = scmp.eq.s32.totalorder %s34_s14, 0  ;;  %p45_p13 = scmp.eq.s32.totalorder %s1972_s24, 0 }
  0x5c   : > { %p1713_p6 = scmp.lt.s32.totalorder %s1972_s24, 2  ;;  %p2487_p3 = scmp.eq.s32.totalorder %s2072_s25, 1 }
  0x5d   : > { %s2201_s11 = scalar_select %p35_p4, %s1968_s23, %s37_s10  }
  0x5e   : > { %p46_p10 = por %p45_p13, %p44_p8  ;;  %p2205_p5 = por %p2487_p3, %p44_p8 }
  0x5f   : > { %s396_s26 = sand.u32 1, %s1968_s23   ;;  %s1508_s30 = sshll.u32 %s1972_s24, 7 }
  0x60   : > { %s1507_s18 = sshll.u32 %s396_s26, 3  ;;  %s2214_s15 = scalar_lea.hbm %s2457_s0, %s1508_s30 }
  0x61   : > { %s400_s17 = scalar_lea.vmem [#allocation2], %s1507_s18  ;;  %p2216_p11 = pnand %p1713_p6, %p46_p10 }
  0x62   : > { %s407_s28 = sshll.u32 %s400_s17, 4  ;;  %s397_s16 = scalar_lea.sflag [#allocation3], %s396_s26  ;;  %s2220_s28 = int_to_ptr.vmem [resolvable:$true] %s407_s28 }
  0x63   : > { %s1868_s9 = scalar_lea.hbm %s2214_s15, 128  ;;  %p1870_p9 = pneg %p2216_p11 }
  0x64   : > { %p1869_p7 = scmp.ne.s32.totalorder %s2214_s15, %s1868_s9  ;;  %s1873_s30 = scalar_lea.hbm %s2457_s0, 256 }
  0x65   : > { %p1874_p1 = scmp.lt.u32.totalorder %s2214_s15, %s2457_s0  ;;  %p1875_p2 = scmp.lt.u32.totalorder %s1873_s30, %s1868_s9 }
  0x66   : > { %p1871_p12 = pnand %p1870_p9, %p1869_p7  ;;  %p1877_p8 = scmp.lt.u32.totalorder %s1868_s9, %s2214_s15 }
  0x67   : > { %p1876_p4 = por %p1875_p2, %p1874_p1 }
  0x68   : > { %p1872_p0 = pneg %p1871_p12 }
  0x69   : > { %p1878_p13 = por %p1877_p8, %p1876_p4 }
  0x6b   : > { %p1879_p6 = pnand %p1878_p13, %p1872_p0 }
  0x6d   : > { %1882 = shalt.err (!%p1879_p6)
}
  0x6e   : > { %s1883_s26 = scalar_lea.vmem %s2220_s28, 128  ;;  %s1979_s20 = smov [#allocation2]  }
  0x6f   : > { %p1884_p10 = scmp.ne.s32.totalorder %s2220_s28, %s1883_s26  ;;  %s1888_s17 = sshll.u32 %s1979_s20, 4  ;;  %s1889_s17 = int_to_ptr.vmem [resolvable:$false] %s1888_s17 }
  0x70   : > { %s1890_s14 = scalar_lea.vmem %s1889_s17, 256  ;;  %p1891_p12 = scmp.lt.s32.totalorder %s2220_s28, %s1889_s17 }
  0x71   : > { %p1886_p3 = pnand %p1884_p10, %p1870_p9  ;;  %p1892_p1 = scmp.lt.s32.totalorder %s1890_s14, %s1883_s26 }
  0x73   : > { %p1887_p7 = pneg %p1886_p3  ;;  %p1893_p2 = por %p1892_p1, %p1891_p12 }
  0x75   : > { %p1894_p4 = pnand %p1893_p2, %p1887_p7 }
  0x77   : > { %1897 = shalt.err (!%p1894_p4)
}
  0x78   : > { %1705 = dma.hbm_to_vmem [thread:$0]  (!%p2216_p11), %s2214_s15, 128, %s2220_s28, %s397_s16  }
  0x79   : > { %p2490_p0 = scmp.ne.s32.totalorder %s2484_s29, 0 }
  0x7a   : > { %s2250_s9 = sand.u32 (!%p2490_p0), 1, %s1964_s22   ;;  %p2491_p9 = scmp.ne.s32.totalorder (!%p2490_p0), %s2481_s27, 0 }
  0x7b   : > { %422 = sbr.rel (%p2490_p0) target bundleno = 1787 (0x6fb), region = 68  ;;  %s1510_s10 = sshll.u32 (!%p2490_p0), %s2250_s9, 3 }
  0x7c   : > { %s425_s30 = scalar_lea.sflag (!%p2490_p0), [#allocation3], %s2250_s9  ;;  %s428_s18 = scalar_lea.vmem (!%p2490_p0), [#allocation2], %s1510_s10 }
  0x82   : > { %1943 = dma.done.wait (%p2491_p9), %s425_s30, 128  }
  0x83   : > { %1945 = vsyncadd (%p2491_p9), %s425_s30, 4294967168  ;;  %p2492_p11 = scmp.eq.s32.totalorder %s2072_s25, 0 }
  0x85   : > { %1947 = dma.done.wait (%p2492_p11), [#allocation6], 512   ;;  %p2493_p8 = pmov %p2492_p11 }
  0x87   : > { %1949 = vsyncadd (%p2493_p8), [#allocation6], 4294966784  ;;  %p2494_p13 = pmov %p2493_p8 }
  0x88   : > { %p2495_p6 = pmov %p2493_p8 }
  0x89   : > { %1951 = dma.done.wait (%p2494_p13), [#allocation9], 256  }
  0x8a   : > { %1953 = vsyncadd (%p2495_p6), [#allocation9], 4294967040  ;;  %v1980_v0 = vmov 0.0   ;;  %vm1981_vm0 = vmmov 0   ;;  %v1760_v1 = vld [vmem:[#allocation5] sm:$0xff]   ;;  %v1761_v2 = vld [vmem:[#allocation7] sm:$0xff]  }
  0x8b   : > { %1580 = vmatprep.subr.bf16.mxu0 %v1980_v0  ;;  %1588 = vmatprep.subr.bf16.mxu1 %v1980_v0  ;;  %v1762_v3 = vld [vmem:[#allocation5 + $0x8] sm:$0xff]   ;;  %v1763_v4 = vld [vmem:[#allocation7 + $0x8] sm:$0xff]   ;;  %vm513_vm1 = vcmask 261120   ;;  %v1764_v7 = vld [vmem:[%s2463_s6] sm:$0xff]   ;;  %vm707_vm2 = vcmask 64512   ;;  %s1982_s20 = smov 120  }
  0x8c   : > { %1584 = vmatprep.mubr.msk.bf16.mxu0 %vm1981_vm0, %v1980_v0  ;;  %1592 = vmatprep.mubr.msk.bf16.mxu1 %vm1981_vm0, %v1980_v0  ;;  %v2276_v5 = vld [vmem:[%s428_s18] sm:$0xff]  ;;  %s1983_s17 = smov 104   ;;  %s1984_s14 = smov 112   ;;  %vm958_vm3 = vcmask 1043456  }
  0x8d   : > { %1581 = vmatpush3.bf16.msra.mxu0 %v1760_v1  ;;  %1589 = vmatpush3.bf16.msra.mxu1 %v1761_v2  ;;  %v489_v6 = vpack.c.bf16 %v2276_v5, %v2276_v5  ;;  %v1765_v8 = vld [vmem:[%s2463_s6 + $0x8] sm:$0xff]   ;;  %v1515_v9 = vld [vmem:[%s2460_s3] ss:$0 sm:$0xff]  ;;  %p484_p10 = scmp.lt.s32.totalorder %s2072_s25, 1  ;;  %s2496_s19 = sld [smem:[#allocation17_spill]] }
  0x8e   : > { %1582 = vmatprep.subr.bf16.mxu0 %v1980_v0  ;;  %1590 = vmatprep.subr.bf16.mxu1 %v1980_v0  ;;  %v1519_v10 = vld [vmem:[%s2462_s5] ss:$0 sm:$0xff]  ;;  %s2498_s18 = sld [smem:[#allocation19_spill]]  ;;  %s483_s29 = scalar_lea.vmem [#allocation10], %s1510_s10 }
  0x8f   : > { %v1523_v30 = vld [vmem:[%s2464_s7] ss:$0 sm:$0xff]  ;;  %s485_s27 = scalar_select %p484_p10, %s2072_s25, 1 }
  0x90   : > { %s1393_s15 = sshll.u32 %s483_s29, 4  ;;  %s2499_s16 = sld [smem:[#allocation20_spill]]  ;;  %s2414_s15 = int_to_ptr.vmem [resolvable:$true] %s1393_s15 }
  0x91   : > { %1583 = vmatpush3.bf16.msra.mxu0 %v1762_v3  ;;  %1591 = vmatpush3.bf16.msra.mxu1 %v1763_v4  ;;  %s486_s28 = scalar_lea.vmem %s2458_s1, %s485_s27  ;;  %s1544_s27 = sshll.u32 %s2072_s25, 7 }
  0x92   : > { %1596 = vmatprep.subr.bf16.mxu0 %v1980_v0  ;;  %1604 = vmatprep.subr.bf16.mxu1 %v1980_v0  ;;  %v1531_v42 = vld [vmem:[%s486_s28] ss:$0 sm:$0xff]  ;;  %s1380_s26 = scalar_lea.sflag [#allocation4], %s2250_s9  ;;  %s1985_s25 = smov [#allocation10]  }
  0x93   : > { %s1902_s10 = sshll.u32 %s1985_s25, 4  ;;  %s1903_s10 = int_to_ptr.vmem [resolvable:$false] %s1902_s10 }
  0x94   : > { %1585 = vmatmul.mubr.msk.bf16.vlgmr.msra.gmra.mrb[0].mxu0 %vm513_vm1, %v489_v6  ;;  %1593 = vmatmul.mubr.msk.bf16.vlgmr.msra.gmra.mrb[0].mxu1 %vm513_vm1, %v489_v6  ;;  %p1905_p1 = scmp.lt.s32.totalorder %s2414_s15, %s1903_s10 }
  0x95   : > { %1600 = vmatprep.mubr.msk.bf16.mxu0 %vm1981_vm0, %v1980_v0  ;;  %1606 = vmatprep.mubr.msk.bf16.mxu1 %vm1981_vm0, %v1980_v0 }
  0x96   : > { %1597 = vmatpush3.bf16.msra.mxu0 %v1764_v7 }
  0x97   : > { %1598 = vmatprep.subr.bf16.mxu0 %v1980_v0 }
  0x9a   : > { %1599 = vmatpush3.bf16.msra.mxu0 %v1765_v8 }
  0x9b   : > { %1610 = vmatprep.subr.bf16.mxu0 %v1980_v0 }
  0x9d   : > { %1601 = vmatmul.mubr.msk.bf16.vlgmr.msra.gmra.mrb[4].mxu0 %vm513_vm1, %v489_v6 }
  0x9e   : > { %1612 = vmatprep.mubr.msk.bf16.mxu0 %vm1981_vm0, %v1980_v0 }
 0x167   : > { %v551_v11 = vpop.f32.mrb[0].mxu0  ;;  %v615_v13 = vpop.f32.mrb[0].mxu1 }
 0x168   : > { %v552_v12 = vadd.f32 %v1515_v9, %v551_v11  ;;  %v1586_v14 = vpop.f32.mrb[1].mxu0  ;;  %v616_v15 = vadd.f32 %v1519_v10, %v615_v13  ;;  %v1594_v16 = vpop.f32.mrb[1].mxu1 }
 0x169   : > { %v554_v17 = vpop.f32.mrb[2].mxu0  ;;  %v618_v19 = vpop.f32.mrb[2].mxu1 }
 0x16a   : > { %v557_v18 = vpack.c.bf16 %v552_v12, %v552_v12  ;;  %v1587_v20 = vpop.f32.mrb[3].mxu0  ;;  %v621_v21 = vpack.c.bf16 %v616_v15, %v616_v15  ;;  %v1595_v22 = vpop.f32.mrb[3].mxu1 }
 0x16c   : > { %687 = vrot.lane.b32.xlu1 %v557_v18, %s1982_s20  ;;  %694 = vrot.lane.b32.xlu0 %v621_v21, %s1982_s20  ;;  %v712_v23 = vsel %vm707_vm2, %v621_v21, 0 }
 0x16d   : > { %1605 = vmatpush3.bf16.xpose.msra.mxu1 %v712_v23 }
 0x16e   : > { %1616 = vmatprep.subr.bf16.mxu1 %v1980_v0 }
 0x170   : > { %698 = vrot.lane.b32.xlu1 %v621_v21, %s1983_s17  ;;  %696 = vrot.lane.b32.xlu0 %v621_v21, %s1984_s14  ;;  %v679_v24 = vpop.f32.mrb[4].mxu0 }
 0x171   : > { %v1602_v25 = vpop.f32.mrb[5].mxu0  ;;  %v680_v32 = vadd.f32 %v1523_v30, %v679_v24 }
 0x172   : > { %v682_v26 = vpop.f32.mrb[6].mxu0 }
 0x173   : > { %v1603_v27 = vpop.f32.mrb[7].mxu0  ;;  %v2322_v36 = vpack.c.bf16 %v680_v32, %v680_v32 }
 0x174   : > { %691 = vrot.lane.b32.xlu1 %v557_v18, %s1983_s17  ;;  %689 = vrot.lane.b32.xlu0 %v557_v18, %s1984_s14 }
 0x175   : > { %1607 = vmatmul.mubr.msk.bf16.vlgmr.msra.gmra.mrb[4].mxu1 %vm707_vm2, %v557_v18  ;;  %v960_v38 = vsel %vm958_vm3, %v2322_v36, 0 }
 0x176   : > { %1618 = vmatprep.mubr.msk.bf16.mxu1 %vm1981_vm0, %v1980_v0 }
 0x1de   : > { %v695_v28 = vpop.permute.xlu0 %694  ;;  %v688_v29 = vpop.permute.xlu1 %687 }
 0x1df   : > { %v758_v31 = vsel %vm707_vm2, %v695_v28, 0 }
 0x1e0   : > { %1611 = vmatpush3.bf16.xpose.msra.mxu0 %v758_v31 }
 0x1e1   : > { %1622 = vmatprep.subr.bf16.mxu0 %v1980_v0 }
 0x1e2   : > { %v697_v33 = vpop.permute.xlu0 %696  ;;  %v699_v35 = vpop.permute.xlu1 %698 }
 0x1e3   : > { %v804_v34 = vsel %vm707_vm2, %v697_v33, 0  ;;  %v850_v37 = vsel %vm707_vm2, %v699_v35, 0 }
 0x1e4   : > { %1617 = vmatpush3.bf16.xpose.msra.mxu1 %v804_v34 }
 0x1e5   : > { %1628 = vmatprep.subr.bf16.mxu1 %v1980_v0 }
 0x1e6   : > { %v690_v39 = vpop.permute.xlu0 %689  ;;  %v692_v40 = vpop.permute.xlu1 %691 }
 0x1e7   : > { %1613 = vmatmul.mubr.msk.bf16.vlgmr.msra.gmra.mrb[8].mxu0 %vm707_vm2, %v688_v29 }
 0x1e8   : > { %1623 = vmatpush3.bf16.xpose.msra.mxu0 %v850_v37  ;;  %1624 = vmatprep.mubr.msk.bf16.mxu0 %vm1981_vm0, %v1980_v0 }
 0x1e9   : > { %1634 = vmatprep.subr.bf16.mxu0 %v1980_v0 }
 0x1eb   : > { %1619 = vmatmul.mubr.msk.bf16.vlgmr.msra.gmra.mrb[8].mxu1 %vm707_vm2, %v690_v39 }
 0x1ec   : > { %1629 = vmatpush3.bf16.msra.mxu1 %v960_v38  ;;  %1630 = vmatprep.mubr.msk.bf16.mxu1 %vm1981_vm0, %v1980_v0 }
 0x1ed   : > { %1640 = vmatprep.subr.bf16.mxu1 %v1980_v0 }
 0x1ef   : > { %1625 = vmatmul.mubr.msk.bf16.vlgmr.msra.gmra.mrb[12].mxu0 %vm707_vm2, %v692_v40 }
 0x1f0   : > { %1636 = vmatprep.mubr.msk.bf16.mxu0 %vm1981_vm0, %v1980_v0 }
 0x248   : > { %v748_v41 = vpop.f32.mrb[4].mxu1 }
 0x249   : > { %v892_v43 = vmul.f32 0.35355338, %v748_v41  ;;  %v1608_v44 = vpop.f32.mrb[5].mxu1 }
 0x24a   : > { %v751_v45 = vpop.f32.mrb[6].mxu1  ;;  %v1144_v44 = vld [vmem:[#allocation8] sm:$0xf] }
 0x24b   : > { %v1609_v46 = vpop.f32.mrb[7].mxu1  ;;  %v903_v47 = vadd.f32 %v1531_v42, %v892_v43 }
 0x24d   : > { %v907_v48 = vsel %vm707_vm2, %v903_v47, -inf }
 0x24e   : > { %908 = vmax.xlane.f32.xlu0 %v907_v48  ;;  %v1152_v48 = vsel %vm958_vm3, %v1144_v44, 0 }
 0x2ba   : > { %v794_v49 = vpop.f32.mrb[8].mxu0 }
 0x2bb   : > { %v893_v50 = vmul.f32 0.35355338, %v794_v49  ;;  %v1614_v51 = vpop.f32.mrb[9].mxu0 }
 0x2bc   : > { %v797_v52 = vpop.f32.mrb[10].mxu0 }
 0x2bd   : > { %v1615_v53 = vpop.f32.mrb[11].mxu0  ;;  %v904_v54 = vadd.f32 %v1531_v42, %v893_v50  ;;  %v1145_v50 = vld [vmem:[#allocation8 + $0x4] sm:$0xf] }
 0x2be   : > { %v840_v55 = vpop.f32.mrb[8].mxu1  ;;  %v1198_v53 = vsel %vm958_vm3, %v1145_v50, 0 }
 0x2bf   : > { %v894_v56 = vmul.f32 0.35355338, %v840_v55  ;;  %v1620_v57 = vpop.f32.mrb[9].mxu1  ;;  %v910_v58 = vsel %vm707_vm2, %v904_v54, -inf }
 0x2c0   : > { %v843_v59 = vpop.f32.mrb[10].mxu1  ;;  %911 = vmax.xlane.f32.xlu1 %v910_v58 }
 0x2c1   : > { %v1621_v60 = vpop.f32.mrb[11].mxu1  ;;  %v905_v61 = vadd.f32 %v1531_v42, %v894_v56 }
 0x2c2   : > { %v886_v62 = vpop.f32.mrb[12].mxu0 }
 0x2c3   : > { %v895_v63 = vmul.f32 0.35355338, %v886_v62  ;;  %v1626_v1 = vpop.f32.mrb[13].mxu0  ;;  %v913_v2 = vsel %vm707_vm2, %v905_v61, -inf }
 0x2c4   : > { %914 = vmax.xlane.f32.xlu0 %v913_v2  ;;  %v889_v3 = vpop.f32.mrb[14].mxu0 }
 0x2c5   : > { %v1627_v4 = vpop.f32.mrb[15].mxu0  ;;  %v906_v6 = vadd.f32 %v1531_v42, %v895_v63 }
 0x2c7   : > { %v916_v7 = vsel %vm707_vm2, %v906_v6, -inf }
 0x2c8   : > { %917 = vmax.xlane.f32.xlu0 %v916_v7 }
 0x2d1   : > { %701 = vrot.lane.b32.xlu1 %v2322_v36, %s1982_s20  ;;  %s1898_s20 = scalar_lea.vmem %s2414_s15, 128 }
 0x2d2   : > { %p1899_p3 = scmp.ne.s32.totalorder %s2414_s15, %s1898_s20 }
 0x2d4   : > { %p1900_p7 = pnand %p1899_p3, %p2205_p5 }
 0x2d6   : > { %p1901_p12 = pneg %p1900_p7 }
 0x2db   : > { %v909_v8 = vpop.xlane.xlu0 %908 }
 0x2dc   : > { %v919_v9 = vsub.f32 %v903_v47, %v909_v8 }
 0x2de   : > { %v923_v10 = vmul.f32 1.442695, %v919_v9 }
 0x2e0   : > { %1766 = vpow2.f32 %v923_v10 }
 0x2ea   : > { %v1767_v11 = vpop.eup %1766 }
 0x2eb   : > { %v931_v12 = vsel %vm707_vm2, %v1767_v11, 0.0 }
 0x2f5   : > { %932 = vadd.xlane.f32.xlu1 %v931_v12 }
 0x34d   : > { %v912_v13 = vpop.xlane.xlu1 %911 }
 0x34e   : > { %v920_v14 = vsub.f32 %v904_v54, %v912_v13  ;;  %v1146_v54 = vld [vmem:[#allocation8 + $0x8] sm:$0xf] }
 0x34f   : > { %v1244_v58 = vsel %vm958_vm3, %v1146_v54, 0 }
 0x350   : > { %v925_v15 = vmul.f32 1.442695, %v920_v14 }
 0x351   : > { %v915_v16 = vpop.xlane.xlu0 %914  ;;  %v702_v17 = vpop.permute.xlu1 %701 }
 0x352   : > { %1768 = vpow2.f32 %v925_v15  ;;  %v921_v18 = vsub.f32 %v905_v61, %v915_v16  ;;  %v1006_v19 = vsel %vm958_vm3, %v702_v17, 0  ;;  %v1147_v61 = vld [vmem:[#allocation8 + $0xc] sm:$0xf] }
 0x353   : > { %1635 = vmatpush3.bf16.msra.mxu0 %v1006_v19  ;;  %v1290_v2 = vsel %vm958_vm3, %v1147_v61, 0 }
 0x354   : > { %v927_v20 = vmul.f32 1.442695, %v921_v18  ;;  %1646 = vmatprep.subr.bf16.mxu0 %v1980_v0 }
 0x355   : > { %v918_v21 = vpop.xlane.xlu0 %917 }
 0x356   : > { %1770 = vpow2.f32 %v927_v20  ;;  %v922_v22 = vsub.f32 %v906_v6, %v918_v21 }
 0x358   : > { %v929_v23 = vmul.f32 1.442695, %v922_v22 }
 0x35a   : > { %1772 = vpow2.f32 %v929_v23 }
 0x35c   : > { %v1769_v24 = vpop.eup %1768 }
 0x35d   : > { %v934_v25 = vsel %vm707_vm2, %v1769_v24, 0.0 }
 0x35e   : > { %935 = vadd.xlane.f32.xlu0 %v934_v25 }
 0x360   : > { %v1771_v26 = vpop.eup %1770 }
 0x361   : > { %v937_v27 = vsel %vm707_vm2, %v1771_v26, 0.0 }
 0x362   : > { %938 = vadd.xlane.f32.xlu1 %v937_v27 }
 0x364   : > { %v1773_v28 = vpop.eup %1772 }
 0x365   : > { %v940_v29 = vsel %vm707_vm2, %v1773_v28, 0.0 }
 0x366   : > { %941 = vadd.xlane.f32.xlu0 %v940_v29 }
 0x373   : > { %705 = vrot.lane.b32.xlu1 %v2322_v36, %s1983_s17  ;;  %s2497_s17 = sld [smem:[#allocation18_spill]] }
 0x37c   : > { %703 = vrot.lane.b32.xlu0 %v2322_v36, %s1984_s14 }
 0x382   : > { %v933_v30 = vpop.xlane.xlu1 %932 }
 0x383   : > { %1774 = vrcp.f32 %v933_v30 }
 0x38d   : > { %v1775_v31 = vpop.eup %1774 }
 0x38e   : > { %v947_v32 = vmul.f32 %v1775_v31, %v1767_v11 }
 0x390   : > { %v951_v33 = vpack.c.bf16 %v947_v32, %v947_v32 }
 0x392   : > { %1631 = vmatmul.mubr.msk.bf16.vlgmr.msra.gmra.mrb[12].mxu1 %vm707_vm2, %v951_v33 }
 0x393   : > { %1642 = vmatprep.mubr.msk.bf16.mxu1 %vm1981_vm0, %v1980_v0 }
 0x3eb   : > { %v936_v34 = vpop.xlane.xlu0 %935 }
 0x3ec   : > { %1776 = vrcp.f32 %v936_v34  ;;  %v1540_v34 = vld [vmem:[%s2496_s19] ss:$0 sm:$0xff]  ;;  %s2412_s19 = scalar_lea.hbm %s2499_s16, %s1544_s27 }
 0x3ef   : > { %v939_v35 = vpop.xlane.xlu1 %938 }
 0x3f0   : > { %1778 = vrcp.f32 %v939_v35 }
 0x3f3   : > { %v942_v37 = vpop.xlane.xlu0 %941  ;;  %v706_v36 = vpop.permute.xlu1 %705 }
 0x3f4   : > { %1780 = vrcp.f32 %v942_v37  ;;  %v1098_v46 = vsel %vm958_vm3, %v706_v36, 0 }
 0x3f6   : > { %v1777_v38 = vpop.eup %1776 }
 0x3f7   : > { %v948_v39 = vmul.f32 %v1777_v38, %v1769_v24  ;;  %v704_v40 = vpop.permute.xlu0 %703 }
 0x3f8   : > { %v1052_v41 = vsel %vm958_vm3, %v704_v40, 0 }
 0x3f9   : > { %1641 = vmatpush3.bf16.msra.mxu1 %v1052_v41  ;;  %v952_v42 = vpack.c.bf16 %v948_v39, %v948_v39 }
 0x3fa   : > { %v1779_v43 = vpop.eup %1778  ;;  %1652 = vmatprep.subr.bf16.mxu1 %v1980_v0 }
 0x3fb   : > { %v949_v45 = vmul.f32 %v1779_v43, %v1771_v26  ;;  %1637 = vmatmul.mubr.msk.bf16.vlgmr.msra.gmra.mrb[16].mxu0 %vm707_vm2, %v952_v42 }
 0x3fc   : > { %1647 = vmatpush3.bf16.msra.mxu0 %v1098_v46  ;;  %1648 = vmatprep.mubr.msk.bf16.mxu0 %vm1981_vm0, %v1980_v0 }
 0x3fd   : > { %v953_v47 = vpack.c.bf16 %v949_v45, %v949_v45  ;;  %1658 = vmatprep.subr.bf16.mxu0 %v1980_v0 }
 0x3fe   : > { %v1781_v49 = vpop.eup %1780 }
 0x3ff   : > { %v950_v51 = vmul.f32 %v1781_v49, %v1773_v28  ;;  %1643 = vmatmul.mubr.msk.bf16.vlgmr.msra.gmra.mrb[16].mxu1 %vm707_vm2, %v953_v47 }
 0x400   : > { %1653 = vmatpush3.bf16.msra.mxu1 %v1152_v48  ;;  %1654 = vmatprep.mubr.msk.bf16.mxu1 %vm1981_vm0, %v1980_v0 }
 0x401   : > { %v954_v52 = vpack.c.bf16 %v950_v51, %v950_v51  ;;  %1664 = vmatprep.subr.bf16.mxu1 %v1980_v0 }
 0x403   : > { %1649 = vmatmul.mubr.msk.bf16.vlgmr.msra.gmra.mrb[20].mxu0 %vm707_vm2, %v954_v52  ;;  %v1542_v52 = vld [vmem:[%s2498_s18] ss:$0 sm:$0xff] }
 0x404   : > { %1659 = vmatpush3.bf16.msra.mxu0 %v1198_v53  ;;  %1660 = vmatprep.mubr.msk.bf16.mxu0 %vm1981_vm0, %v1980_v0 }
 0x405   : > { %1670 = vmatprep.subr.bf16.mxu0 %v1980_v0 }
 0x465   : > { %v996_v55 = vpop.f32.mrb[12].mxu1 }
 0x466   : > { %v1140_v56 = vpack.c.bf16 %v996_v55, %v996_v55  ;;  %v1632_v57 = vpop.f32.mrb[13].mxu1 }
 0x467   : > { %v999_v59 = vpop.f32.mrb[14].mxu1 }
 0x468   : > { %v1633_v60 = vpop.f32.mrb[15].mxu1  ;;  %1655 = vmatmul.mubr.msk.bf16.vlgmr.msra.gmra.mrb[20].mxu1 %vm707_vm2, %v1140_v56 }
 0x469   : > { %1665 = vmatpush3.bf16.msra.mxu1 %v1244_v58  ;;  %1666 = vmatprep.mubr.msk.bf16.mxu1 %vm1981_vm0, %v1980_v0 }
 0x4ce   : > { %v1042_v62 = vpop.f32.mrb[16].mxu0 }
 0x4cf   : > { %v1141_v63 = vpack.c.bf16 %v1042_v62, %v1042_v62  ;;  %v1638_v1 = vpop.f32.mrb[17].mxu0 }
 0x4d0   : > { %v1045_v3 = vpop.f32.mrb[18].mxu0 }
 0x4d1   : > { %v1639_v4 = vpop.f32.mrb[19].mxu0  ;;  %1661 = vmatmul.mubr.msk.bf16.vlgmr.msra.gmra.mrb[24].mxu0 %vm707_vm2, %v1141_v63 }
 0x4d2   : > { %v1088_v6 = vpop.f32.mrb[16].mxu1  ;;  %1671 = vmatpush3.bf16.msra.mxu0 %v1290_v2  ;;  %1672 = vmatprep.mubr.msk.bf16.mxu0 %vm1981_vm0, %v1980_v0 }
 0x4d3   : > { %v1142_v7 = vpack.c.bf16 %v1088_v6, %v1088_v6  ;;  %v1644_v8 = vpop.f32.mrb[17].mxu1 }
 0x4d4   : > { %v1091_v9 = vpop.f32.mrb[18].mxu1 }
 0x4d5   : > { %v1645_v10 = vpop.f32.mrb[19].mxu1  ;;  %1667 = vmatmul.mubr.msk.bf16.vlgmr.msra.gmra.mrb[24].mxu1 %vm707_vm2, %v1142_v7 }
 0x4d6   : > { %v1134_v11 = vpop.f32.mrb[20].mxu0 }
 0x4d7   : > { %v1143_v12 = vpack.c.bf16 %v1134_v11, %v1134_v11  ;;  %v1650_v13 = vpop.f32.mrb[21].mxu0 }
 0x4d8   : > { %v1137_v14 = vpop.f32.mrb[22].mxu0 }
 0x4d9   : > { %v1651_v15 = vpop.f32.mrb[23].mxu0  ;;  %1673 = vmatmul.mubr.msk.bf16.vlgmr.msra.gmra.mrb[28].mxu0 %vm707_vm2, %v1143_v12 }
 0x53b   : > { %v1188_v16 = vpop.f32.mrb[20].mxu1 }
 0x53c   : > { %v1656_v17 = vpop.f32.mrb[21].mxu1  ;;  %v1332_v0 = vsel %vm513_vm1, %v1188_v16, 0.0 }
 0x53d   : > { %v1191_v18 = vpop.f32.mrb[22].mxu1 }
 0x53e   : > { %v1657_v19 = vpop.f32.mrb[23].mxu1 }
 0x5a4   : > { %v1234_v20 = vpop.f32.mrb[24].mxu0 }
 0x5a5   : > { %v1333_v21 = vsel %vm513_vm1, %v1234_v20, 0.0  ;;  %v1662_v22 = vpop.f32.mrb[25].mxu0 }
 0x5a6   : > { %v1334_v23 = vadd.f32 %v1333_v21, %v1332_v0  ;;  %v1237_v24 = vpop.f32.mrb[26].mxu0 }
 0x5a7   : > { %v1663_v25 = vpop.f32.mrb[27].mxu0 }
 0x5a8   : > { %v1280_v26 = vpop.f32.mrb[24].mxu1 }
 0x5a9   : > { %v1335_v27 = vsel %vm513_vm1, %v1280_v26, 0.0  ;;  %v1668_v28 = vpop.f32.mrb[25].mxu1 }
 0x5aa   : > { %v1336_v29 = vadd.f32 %v1335_v27, %v1334_v23  ;;  %v1283_v30 = vpop.f32.mrb[26].mxu1 }
 0x5ab   : > { %v1669_v31 = vpop.f32.mrb[27].mxu1 }
 0x5ac   : > { %v1326_v32 = vpop.f32.mrb[28].mxu0 }
 0x5ad   : > { %v1337_v33 = vsel %vm513_vm1, %v1326_v32, 0.0  ;;  %v1674_v35 = vpop.f32.mrb[29].mxu0 }
 0x5ae   : > { %v1338_v37 = vadd.f32 %v1337_v33, %v1336_v29  ;;  %v1329_v38 = vpop.f32.mrb[30].mxu0 }
 0x5af   : > { %v1675_v39 = vpop.f32.mrb[31].mxu0 }
 0x5b0   : > { %v1346_v40 = vadd.f32 %v1540_v34, %v1338_v37 }
 0x5b2   : > { %v1347_v36 = vadd.f32 %v1346_v40, %v2276_v5  ;;  %v1541_v5 = vld [vmem:[%s2497_s17] ss:$0 sm:$0xff]  ;;  %s1904_s17 = scalar_lea.vmem %s1903_s10, 256 }
 0x5b3   : > { %p1906_p2 = scmp.lt.s32.totalorder %s1904_s17, %s1898_s20 }
 0x5b4   : > { %v1348_v41 = vsel %vm513_vm1, %v1347_v36, 0.0 }
 0x5b5   : > { %1349 = vadd.xlane.f32.xlu1 %v1348_v41  ;;  %p1907_p4 = por %p1906_p2, %p1905_p1 }
 0x5b7   : > { %p1908_p0 = pnand %p1907_p4, %p1901_p12 }
 0x642   : > { %v1350_v42 = vpop.xlane.xlu1 %1349 }
 0x643   : > { %v1352_v43 = vmul.f32 0.03125, %v1350_v42 }
 0x645   : > { %v1353_v44 = vsub.f32 %v1347_v36, %v1352_v43 }
 0x647   : > { %v1354_v45 = vmul.f32 %v1353_v44, %v1353_v44 }
 0x649   : > { %v1355_v46 = vsel %vm513_vm1, %v1354_v45, 0.0 }
 0x64a   : > { %1356 = vadd.xlane.f32.xlu0 %v1355_v46 }
 0x6d7   : > { %v1357_v47 = vpop.xlane.xlu0 %1356 }
 0x6d8   : > { %v1358_v48 = vmul.f32 0.03125, %v1357_v47 }
 0x6da   : > { %v1359_v49 = vadd.f32 1e-12, %v1358_v48 }
 0x6dc   : > { %1782 = vrsqrt.f32 %v1359_v49 }
 0x6e6   : > { %v1783_v50 = vpop.eup %1782 }
 0x6e7   : > { %v1361_v51 = vmul.f32 %v1783_v50, %v1353_v44 }
 0x6e9   : > { %v1369_v53 = vmul.f32 %v1541_v5, %v1361_v51 }
 0x6eb   : > { %v1377_v54 = vadd.f32 %v1542_v52, %v1369_v53 }
 0x6ed   : > { %1378 = vst.msk [vmem:[%s483_s29] sm:$0xff] %vm513_vm1, %v1377_v54 }
 0x6ee   : > { %1911 = shalt.err (!%p1908_p0)
}
 0x6ef   : > { %s1912_s9 = scalar_lea.hbm %s2412_s19, 128  ;;  %s1916_s18 = scalar_lea.hbm %s2499_s16, 256 }
 0x6f0   : > { %p1913_p9 = scmp.ne.s32.totalorder %s2412_s19, %s1912_s9  ;;  %p1917_p13 = scmp.lt.u32.totalorder %s2412_s19, %s2499_s16 }
 0x6f1   : > { %p1918_p6 = scmp.lt.u32.totalorder %s1916_s18, %s1912_s9  ;;  %p1920_p3 = scmp.lt.u32.totalorder %s1912_s9, %s2412_s19 }
 0x6f2   : > { %p1914_p11 = pnand %p1913_p9, %p2205_p5 }
 0x6f3   : > { %p1919_p10 = por %p1918_p6, %p1917_p13 }
 0x6f4   : > { %p1915_p8 = pneg %p1914_p11 }
 0x6f5   : > { %p1921_p7 = por %p1920_p3, %p1919_p10 }
 0x6f7   : > { %p1922_p12 = pnand %p1921_p7, %p1915_p8 }
 0x6f9   : > { %1925 = shalt.err (!%p1922_p12)
}
 0x6fa   : > { %1690 = dma.vmem_to_hbm [thread:$0]  (%p2205_p5), %s2414_s15, 128, %s2412_s19, %s1380_s26  }
 0x6fb PF: > { %s2500_s28 = sld [smem:[#allocation15_spill]]  ;;  %s2501_s13 = sld [smem:[#allocation16_spill]] }
 0x6fc   : > { %p2503_p2 = scmp.ge.s32.totalorder %s1972_s24, 2 }
 0x701   : > { %s1405_s20 = sand.u32 1, %s2500_s28   ;;  %p2502_p1 = scmp.ne.s32.totalorder %s2501_s13, 0 }
 0x702   : > { %s1406_s25 = scalar_lea.sflag [#allocation4], %s1405_s20 }
 0x703   : > { %p1707_p4 = pnand %p2503_p2, %p2502_p1 }
 0x705   : > { %1955 = dma.done.wait (!%p1707_p4), %s1406_s25, 128  }
 0x706   : > { %1957 = vsyncadd (!%p1707_p4), %s1406_s25, 4294967168  ;;  %s2504_s10 = smov %s2191_s21  ;;  %p27_p0 = scmp.ge.s32.totalorder %s2191_s21, 4  }
 0x707   : > { %s2505_s21 = smov %s1964_s22  ;;  %s2506_s22 = smov %s1968_s23 }
 0x708   : > { %s2507_s23 = smov %s2201_s11  ;;  %s2508_s24 = smov %s2504_s10 }
 0x709   :  { %29 = sbr.rel (!%p27_p0) target bundleno = 12 (0xc), region = 128 }
 0x710   :  { %1411 = vsyncpa [#allocation3], 1 }
 0x711   :  { %1413 = vsyncpa [#allocation3 + $0x1], 1 }
 0x712   :  { %1414 = vsyncpa [#allocation6], 1 }
 0x713   :  { %1415 = vsyncpa [#allocation9], 1 }
 0x714   :  { %1416 = vsyncpa [#allocation4], 1 }
 0x715   :  { %1418 = vsyncpa [#allocation4 + $0x1], 1 }

</bundles_post_ra>
